<compile_context>
chip_gen: v7x
topology: tpu7x:2x2x1
jax: 0.10.0
libtpu: 0.0.40
codegen_flags: <defaults>
</compile_context>

<pallas_src>
import functools
import itertools

import numpy as np
import jax
import jax.numpy as jnp
from jax.experimental import pallas as pl
from jax.experimental.pallas import tpu as pltpu

try:  # use scipy's Hungarian solver when available (exact + fast)
    from scipy.optimize import linear_sum_assignment as _scipy_lsa
except Exception:  # pragma: no cover
    _scipy_lsa = None


# ----------------------------------------------------------------------------
# Pallas kernel: one row-tile of C = cost_span*dis + cost_class*(-prob_gather)
# ----------------------------------------------------------------------------
def _cost_kernel(logits_ref, left_ref, right_ref,
                 neg_onehot_ref, gb_ref, c_ref, *, cost_span_w):
    # logits_ref:     [TILE_N, ncls]  f32
    # left/right_ref: [TILE_N, seq]   f32
    # neg_onehot_ref: [ncls, Gp]      bf16  (pre-scaled by -cost_class, resident)
    # gb_ref:         [2, Gp]         f32   (rows = cost_span*gt_left / *gt_right)
    # c_ref:          [TILE_N, Gp]    f32
    logits = logits_ref[...]

    # Softmax normalized on the small [TILE_N, ncls] side BEFORE the matmul
    # (exact divide -> bit-parity with the reference softmax path).
    m = jnp.max(logits, axis=-1, keepdims=True)
    e = jnp.exp(logits - m)                                       # [TILE_N, ncls]
    p = e / jnp.sum(e, axis=-1, keepdims=True)                    # [TILE_N, ncls]

    # class cost: -cost_class * prob[:, gt_ids] == p @ neg_onehot (bf16 MXU,
    # f32 accumulation).
    cls = jnp.dot(p.astype(jnp.bfloat16), neg_onehot_ref[...],
                  preferred_element_type=jnp.float32)             # [TILE_N, Gp]

    tile_n, seq = left_ref.shape
    pos = jax.lax.broadcasted_iota(jnp.int32, (tile_n, seq), 1)   # shared iota

    def first_argmax(x):  # first-occurrence argmax (matches torch/jnp.argmax)
        xmax = jnp.max(x, axis=-1, keepdims=True)
        return jnp.min(jnp.where(x == xmax, pos, seq), axis=-1, keepdims=True)

    # cost_span is folded into the operands (gb pre-scaled in the wrapper);
    # positions fit exactly in f32 as long as seq_len < 2**24.
    gb = gb_ref[...]                                              # [2, Gp]
    gl = gb[0:1, :]
    gr = gb[1:2, :]
    l_idx = first_argmax(left_ref[...]).astype(jnp.float32) * cost_span_w
    r_idx = first_argmax(right_ref[...]).astype(jnp.float32) * cost_span_w
    dis = jnp.abs(l_idx - gl) + jnp.abs(r_idx - gr)               # [TILE_N, Gp]

    c_ref[...] = dis + cls


def _round_up(x, m):
    return ((x + m - 1) // m) * m


def _tpu_vmem_capacity():
    """Per-core VMEM bytes; conservative fallback if the query is unavailable."""
    try:
        info = pltpu.get_tpu_info()
        cap = int(getattr(info, "vmem_capacity_bytes", 0))
        if cap > 0:
            return cap
    except Exception:
        pass
    return 64 << 20  # v7x-class conservative default


def _pick_tile_and_vmem(N, ncls, seq, Gp):
    """Row-tile size + vmem limit, sized from the chip's actual VMEM capacity."""
    vmem_cap = _tpu_vmem_capacity()
    small_vmem = vmem_cap <= (72 << 20)          # v7x-class (64 MiB per TC)
    budget = int(0.70 * vmem_cap)                # ~45 MiB on v7x, ~90 MiB on v5e/v6e

    tile_cap = 256 if small_vmem else 512        # bigger DMAs on 128-MiB chips
    tile = min(tile_cap, _round_up(max(N, 1), 8))
    if small_vmem and N > 8:
        # Guarantee >= 2 grid steps so the "parallel" row axis can shard
        # across both v7x TensorCores (no-op cost elsewhere: ~0.35us/step).
        tile = min(tile, _round_up((N + 1) // 2, 8))

    def footprint(t):
        io = 2 * 4 * t * (ncls + 2 * seq + Gp)           # double-buffered f32 tiles
        resident = 2 * (2 * ncls * Gp + 4 * 8 * Gp)      # bf16 one-hot + padded gt rows
        scratch = 2 * 4 * t * max(seq, Gp)               # in-kernel temporaries headroom
        return io + resident + scratch

    while tile > 8 and footprint(tile) > budget:
        tile = max(8, ((tile // 2) // 8) * 8)
    vmem_limit = int(min(max(footprint(tile) + (4 << 20), 16 << 20),
                         int(0.9 * vmem_cap)))
    return tile, vmem_limit


def compute_cost_matrix(pred_logits, pred_left, pred_right,
                        gt_ids, gt_left, gt_right,
                        *, cost_class=1.0, cost_span=1.0):
    """Returns C with shape [bs, num_queries, total_num_gt] (float32)."""
    assert cost_span >= 0.0, "cost_span must be non-negative (folded into |.|)"
    bs, nq, ncls = pred_logits.shape
    seq = pred_left.shape[-1]
    assert seq < (1 << 24), "boundary positions must be exactly representable in f32"
    G = int(gt_ids.shape[0])
    N = bs * nq

    # Lane-dense output: pad total_num_gt up to a multiple of 128.
    Gp = max(128, _round_up(G, 128))

    logits2 = pred_logits.reshape(N, ncls).astype(jnp.float32)
    left2 = pred_left.reshape(N, seq).astype(jnp.float32)
    right2 = pred_right.reshape(N, seq).astype(jnp.float32)

    gt_ids_p = jnp.full((Gp,), -1, jnp.int32).at[:G].set(gt_ids.astype(jnp.int32))
    gt_left_p = jnp.zeros((Gp,), jnp.float32).at[:G].set(gt_left.astype(jnp.float32))
    gt_right_p = jnp.zeros((Gp,), jnp.float32).at[:G].set(gt_right.astype(jnp.float32))

    # Gather matrix hoisted out of the kernel, pre-scaled by -cost_class and
    # stored in bf16 (values are exactly 0 / -cost_class).  Padding columns use
    # class id -1 so they stay all-zero.
    neg_onehot = ((-float(cost_class)) * (
        jnp.arange(ncls, dtype=jnp.int32)[:, None] == gt_ids_p[None, :]
    ).astype(jnp.float32)).astype(jnp.bfloat16)                    # [ncls, Gp]

    # gt boundaries packed into one resident block, pre-scaled by cost_span.
    gb = jnp.stack([float(cost_span) * gt_left_p,
                    float(cost_span) * gt_right_p], axis=0)        # [2, Gp] f32

    tile_n, vmem_limit = _pick_tile_and_vmem(N, ncls, seq, Gp)

    kernel = functools.partial(_cost_kernel, cost_span_w=float(cost_span))

    # TODO(synk): for very large seq (>=2-4K) a second "arbitrary" grid axis
    # over seq with a carried (running max, first-index) scratch would bound
    # per-step VMEM further; unnecessary at typical matcher shapes.
    c = pl.pallas_call(
        kernel,
        out_shape=jax.ShapeDtypeStruct((N, Gp), jnp.float32),
        grid=(pl.cdiv(N, tile_n),),
        in_specs=[
            pl.BlockSpec((tile_n, ncls), lambda i: (i, 0)),
            pl.BlockSpec((tile_n, seq), lambda i: (i, 0)),
            pl.BlockSpec((tile_n, seq), lambda i: (i, 0)),
            pl.BlockSpec((ncls, Gp), lambda i: (0, 0)),   # resident across grid
            pl.BlockSpec((2, Gp), lambda i: (0, 0)),      # resident across grid
        ],
        out_specs=pl.BlockSpec((tile_n, Gp), lambda i: (i, 0)),
        compiler_params=pltpu.CompilerParams(
            dimension_semantics=("parallel",),
            vmem_limit_bytes=vmem_limit),
    )(logits2, left2, right2, neg_onehot, gb)

    return c[:, :G].reshape(bs, nq, G)


# ----------------------------------------------------------------------------
# Host-side assignment solver.
# TODO(synk): linear_sum_assignment (Hungarian algorithm) is an inherently
# sequential O(n^3) host algorithm with no clean Pallas equivalent; solved on
# CPU (scipy when available, exact brute force fallback for tiny problems).
# ----------------------------------------------------------------------------
def _linear_sum_assignment_exact(cost):
    cost = np.asarray(cost, dtype=np.float64)
    nr, nc = cost.shape
    if nr < nc:
        cj, ci = _linear_sum_assignment_exact(cost.T)
        order = np.argsort(ci)
        return ci[order], cj[order]
    best, best_cost = None, np.inf
    for rows in itertools.permutations(range(nr), nc):
        total = cost[list(rows), range(nc)].sum()
        if total < best_cost:
            best_cost, best = total, rows
    row_ind = np.asarray(best, dtype=np.int64)
    col_ind = np.arange(nc, dtype=np.int64)
    order = np.argsort(row_ind)
    return row_ind[order], col_ind[order]


def _linear_sum_assignment(cost):
    if _scipy_lsa is not None:
        r, c = _scipy_lsa(np.asarray(cost))
        return np.asarray(r, dtype=np.int64), np.asarray(c, dtype=np.int64)
    return _linear_sum_assignment_exact(cost)


class HungarianMatcherPallas:
    def __init__(self, cost_class=1.0, cost_span=1.0,
                 match_boundary_type='f1', solver='hungarian'):
        assert match_boundary_type == 'f1', "only 'f1' boundary cost implemented"
        assert solver == 'hungarian', "only 'hungarian' solver implemented"
        self.cost_class = cost_class
        self.cost_span = cost_span

    def __call__(self, outputs, targets):
        c = compute_cost_matrix(
            outputs['pred_logits'], outputs['pred_left'], outputs['pred_right'],
            targets['labels'], targets['gt_left'], targets['gt_right'],
            cost_class=self.cost_class, cost_span=self.cost_span)
        jax.block_until_ready(c)
        c_np = np.asarray(c)                       # [bs, nq, total_gt]
        sizes = list(targets['sizes'])
        offsets = np.cumsum([0] + sizes)
        indices = []
        for i in range(c_np.shape[0]):
            block = c_np[i, :, offsets[i]:offsets[i + 1]]   # [nq, sizes[i]]
            row, col = _linear_sum_assignment(block)
            indices.append((np.asarray(row, dtype=np.int64),
                            np.asarray(col, dtype=np.int64)))
        return indices


# ----------------------------------------------------------------------------
def _reference_cost(pred_logits, pred_left, pred_right, gt_ids, gt_left, gt_right,
                    cost_class=1.0, cost_span=1.0):
    bs, nq, ncls = pred_logits.shape
    prob = jax.nn.softmax(pred_logits.reshape(-1, ncls), axis=-1)
    cls_cost = -prob[:, gt_ids]
    li = jnp.argmax(pred_left.reshape(bs * nq, -1), axis=-1)
    ri = jnp.argmax(pred_right.reshape(bs * nq, -1), axis=-1)
    dis = (jnp.abs(li[:, None] - gt_left[None, :])
           + jnp.abs(ri[:, None] - gt_right[None, :])).astype(jnp.float32)
    return (cost_span * dis + cost_class * cls_cost).reshape(bs, nq, -1)


if __name__ == "__main__":
    key = jax.random.PRNGKey(0)
    bs, nq, ncls, seq = 2, 8, 8, 16
    sizes = [3, 4]
    G = sum(sizes)

    k1, k2, k3, k4, k5, k6 = jax.random.split(key, 6)
    pred_logits = jax.random.normal(k1, (bs, nq, ncls), jnp.float32)
    pred_left = jax.random.normal(k2, (bs, nq, seq), jnp.float32)
    pred_right = jax.random.normal(k3, (bs, nq, seq), jnp.float32)
    gt_ids = jax.random.randint(k4, (G,), 0, ncls, jnp.int32)
    gt_left = jax.random.randint(k5, (G,), 0, seq, jnp.int32)
    gt_right = jax.random.randint(k6, (G,), 0, seq, jnp.int32)

    outputs = {'pred_logits': pred_logits, 'pred_left': pred_left,
               'pred_right': pred_right}
    targets = {'labels': gt_ids, 'gt_left': gt_left, 'gt_right': gt_right,
               'sizes': sizes}

    # Run the Pallas cost-matrix kernel and check against the pure-JAX
    # reference (tolerance covers the bf16 class-prob gather operands; the
    # softmax itself is normalized with an exact f32 divide).
    C = compute_cost_matrix(pred_logits, pred_left, pred_right,
                            gt_ids, gt_left, gt_right,
                            cost_class=1.0, cost_span=1.0)
    jax.block_until_ready(C)
    C_ref = _reference_cost(pred_logits, pred_left, pred_right,
                            gt_ids, gt_left, gt_right)
    np.testing.assert_allclose(np.asarray(C), np.asarray(C_ref),
                               rtol=1e-3, atol=5e-3)

    # Full matcher (kernel + host-side Hungarian assignment).
    matcher = HungarianMatcherPallas(cost_class=1.0, cost_span=1.0)
    indices = matcher(outputs, targets)
    assert len(indices) == bs
    for (row, col), sz in zip(indices, sizes):
        assert len(row) == len(col) == min(nq, sz)

    print("KERNEL_OK")
</pallas_src>

<mosaic_0001>
module attributes {stable_mosaic.version = 11 : i64} {
  func.func @_cost_kernel(%arg0: i32, %arg1: memref<8x8xf32, #tpu.memory_space<vmem>>, %arg2: memref<8x16xf32, #tpu.memory_space<vmem>>, %arg3: memref<8x16xf32, #tpu.memory_space<vmem>>, %arg4: memref<8x128xbf16, #tpu.memory_space<vmem>>, %arg5: memref<2x128xf32, #tpu.memory_space<vmem>>, %arg6: memref<8x128xf32, #tpu.memory_space<vmem>>) attributes {dimension_semantics = [#tpu.dimension_semantics<parallel>], iteration_bounds = array<i64: 2>, scalar_prefetch = 0 : i64, scratch_operands = 0 : i64, tpu.core_type = #tpu.core_type<tc>, window_params = [{transform_indices = @transform_0, window_bounds = array<i64: 8, 8>}, {transform_indices = @transform_1, window_bounds = array<i64: 8, 16>}, {transform_indices = @transform_2, window_bounds = array<i64: 8, 16>}, {pipeline_mode = #tpu.pipeline_mode<synchronous>, transform_indices = @transform_3, window_bounds = array<i64: 8, 128>}, {pipeline_mode = #tpu.pipeline_mode<synchronous>, transform_indices = @transform_4, window_bounds = array<i64: 2, 128>}, {transform_indices = @transform_5, window_bounds = array<i64: 8, 128>}]} {
    %c0 = arith.constant 0 : index
    %c0_0 = arith.constant 0 : index
    %0 = vector.load %arg1[%c0, %c0_0] : memref<8x8xf32, #tpu.memory_space<vmem>>, vector<8x8xf32>
    %cst = arith.constant dense<0xFF800000> : vector<8xf32>
    %1 = vector.multi_reduction <maximumf>, %0, %cst [1] : vector<8x8xf32> to vector<8xf32>
    %2 = vector.shape_cast %1 : vector<8xf32> to vector<8x1xf32>
    %3 = vector.broadcast %2 : vector<8x1xf32> to vector<8x8xf32>
    %4 = arith.subf %0, %3 : vector<8x8xf32>
    %5 = math.exp %4 : vector<8x8xf32>
    %cst_1 = arith.constant dense<0.000000e+00> : vector<8xf32>
    %6 = vector.multi_reduction <add>, %5, %cst_1 [1] : vector<8x8xf32> to vector<8xf32>
    %7 = vector.shape_cast %6 : vector<8xf32> to vector<8x1xf32>
    %8 = vector.broadcast %7 : vector<8x1xf32> to vector<8x8xf32>
    %9 = arith.divf %5, %8 : vector<8x8xf32>
    %10 = arith.truncf %9 : vector<8x8xf32> to vector<8x8xbf16>
    %c0_2 = arith.constant 0 : index
    %c0_3 = arith.constant 0 : index
    %11 = vector.load %arg4[%c0_2, %c0_3] : memref<8x128xbf16, #tpu.memory_space<vmem>>, vector<8x128xbf16>
    %cst_4 = arith.constant dense<0.000000e+00> : vector<8x128xf32>
    %12 = tpu.matmul %10, %11, %cst_4 {dimension_numbers = #tpu.dot_dimension_numbers<[1], [0], [0], [1], [0, 0, 1, 1], [], []>} : vector<8x8xbf16>, vector<8x128xbf16>, vector<8x128xf32> -> vector<8x128xf32>
    %13 = tpu.iota {dimensions = array<i32: 1>} : vector<8x16xi32>
    %c0_5 = arith.constant 0 : index
    %c0_6 = arith.constant 0 : index
    %14 = vector.load %arg5[%c0_5, %c0_6] : memref<2x128xf32, #tpu.memory_space<vmem>>, vector<2x128xf32>
    %15 = vector.extract_strided_slice %14 {offsets = [0, 0], sizes = [1, 128], strides = [1, 1]} : vector<2x128xf32> to vector<1x128xf32>
    %16 = vector.extract_strided_slice %14 {offsets = [1, 0], sizes = [1, 128], strides = [1, 1]} : vector<2x128xf32> to vector<1x128xf32>
    %c0_7 = arith.constant 0 : index
    %c0_8 = arith.constant 0 : index
    %17 = vector.load %arg2[%c0_7, %c0_8] : memref<8x16xf32, #tpu.memory_space<vmem>>, vector<8x16xf32>
    %cst_9 = arith.constant dense<0xFF800000> : vector<8xf32>
    %18 = vector.multi_reduction <maximumf>, %17, %cst_9 [1] : vector<8x16xf32> to vector<8xf32>
    %19 = vector.shape_cast %18 : vector<8xf32> to vector<8x1xf32>
    %20 = vector.broadcast %19 : vector<8x1xf32> to vector<8x16xf32>
    %21 = arith.cmpf oeq, %17, %20 : vector<8x16xf32>
    %c16_i32 = arith.constant 16 : i32
    %22 = vector.broadcast %c16_i32 : i32 to vector<8x16xi32>
    %23 = arith.select %21, %13, %22 : vector<8x16xi1>, vector<8x16xi32>
    %cst_10 = arith.constant dense<2147483647> : vector<8xi32>
    %24 = vector.multi_reduction <minsi>, %23, %cst_10 [1] : vector<8x16xi32> to vector<8xi32>
    %25 = vector.shape_cast %24 : vector<8xi32> to vector<8x1xi32>
    %26 = arith.sitofp %25 : vector<8x1xi32> to vector<8x1xf32>
    %cst_11 = arith.constant 1.000000e+00 : f32
    %27 = vector.broadcast %cst_11 : f32 to vector<8x1xf32>
    %28 = arith.mulf %26, %27 : vector<8x1xf32>
    %c0_12 = arith.constant 0 : index
    %c0_13 = arith.constant 0 : index
    %29 = vector.load %arg3[%c0_12, %c0_13] : memref<8x16xf32, #tpu.memory_space<vmem>>, vector<8x16xf32>
    %cst_14 = arith.constant dense<0xFF800000> : vector<8xf32>
    %30 = vector.multi_reduction <maximumf>, %29, %cst_14 [1] : vector<8x16xf32> to vector<8xf32>
    %31 = vector.shape_cast %30 : vector<8xf32> to vector<8x1xf32>
    %32 = vector.broadcast %31 : vector<8x1xf32> to vector<8x16xf32>
    %33 = arith.cmpf oeq, %29, %32 : vector<8x16xf32>
    %c16_i32_15 = arith.constant 16 : i32
    %34 = vector.broadcast %c16_i32_15 : i32 to vector<8x16xi32>
    %35 = arith.select %33, %13, %34 : vector<8x16xi1>, vector<8x16xi32>
    %cst_16 = arith.constant dense<2147483647> : vector<8xi32>
    %36 = vector.multi_reduction <minsi>, %35, %cst_16 [1] : vector<8x16xi32> to vector<8xi32>
    %37 = vector.shape_cast %36 : vector<8xi32> to vector<8x1xi32>
    %38 = arith.sitofp %37 : vector<8x1xi32> to vector<8x1xf32>
    %cst_17 = arith.constant 1.000000e+00 : f32
    %39 = vector.broadcast %cst_17 : f32 to vector<8x1xf32>
    %40 = arith.mulf %38, %39 : vector<8x1xf32>
    %41 = vector.broadcast %28 : vector<8x1xf32> to vector<8x128xf32>
    %42 = vector.broadcast %15 : vector<1x128xf32> to vector<8x128xf32>
    %43 = arith.subf %41, %42 : vector<8x128xf32>
    %44 = math.absf %43 : vector<8x128xf32>
    %45 = vector.broadcast %40 : vector<8x1xf32> to vector<8x128xf32>
    %46 = vector.broadcast %16 : vector<1x128xf32> to vector<8x128xf32>
    %47 = arith.subf %45, %46 : vector<8x128xf32>
    %48 = math.absf %47 : vector<8x128xf32>
    %49 = arith.addf %44, %48 : vector<8x128xf32>
    %50 = arith.addf %49, %12 : vector<8x128xf32>
    %c0_18 = arith.constant 0 : index
    %c0_19 = arith.constant 0 : index
    %51 = vector.load %arg6[%c0_18, %c0_19] : memref<8x128xf32, #tpu.memory_space<vmem>>, vector<8x128xf32>
    tpu.vector_store %arg6[%c0_18, %c0_19], %50 {strides = array<i32>} : memref<8x128xf32, #tpu.memory_space<vmem>>, vector<8x128xf32>,
    return
  }
  func.func @transform_0(%arg0: i32) -> (i32, i32) {
    %c0_i32 = arith.constant 0 : i32
    %c0_i32_0 = arith.constant 0 : i32
    return %arg0, %c0_i32 : i32, i32
  }
  func.func @transform_1(%arg0: i32) -> (i32, i32) {
    %c0_i32 = arith.constant 0 : i32
    %c0_i32_0 = arith.constant 0 : i32
    return %arg0, %c0_i32 : i32, i32
  }
  func.func @transform_2(%arg0: i32) -> (i32, i32) {
    %c0_i32 = arith.constant 0 : i32
    %c0_i32_0 = arith.constant 0 : i32
    return %arg0, %c0_i32 : i32, i32
  }
  func.func @transform_3(%arg0: i32) -> (i32, i32) {
    %c0_i32 = arith.constant 0 : i32
    %c0_i32_0 = arith.constant 0 : i32
    %c0_i32_1 = arith.constant 0 : i32
    return %c0_i32, %c0_i32_0 : i32, i32
  }
  func.func @transform_4(%arg0: i32) -> (i32, i32) {
    %c0_i32 = arith.constant 0 : i32
    %c0_i32_0 = arith.constant 0 : i32
    %c0_i32_1 = arith.constant 0 : i32
    return %c0_i32, %c0_i32_0 : i32, i32
  }
  func.func @transform_5(%arg0: i32) -> (i32, i32) {
    %c0_i32 = arith.constant 0 : i32
    %c0_i32_0 = arith.constant 0 : i32
    return %arg0, %c0_i32 : i32, i32
  }
}

</mosaic_0001>

<bundles_post_ra>
// kernel: tpu_custom_call.1
= control target key start
LH: loop header
LB: loop body
LE: loop exit
PB: predicated region body
PF: predicated region fallthrough
CT: control target
= control target key end

     0   :  { %10 = vsyncpa [#allocation3], 0  ;;  %s901_s0 = inlined_call_operand.vmem [shape: f32[16,8], index: 0, kind: input, shape index: {}]   ;;  %s902_s1 = inlined_call_operand.vmem [shape: f32[16,16], index: 1, kind: input, shape index: {}]   ;;  %s903_s2 = inlined_call_operand.hbm [shape: f32[16,16], index: 2, kind: input, shape index: {}]   ;;  %s904_s3 = inlined_call_operand.vmem [shape: bf16[8,128], index: 3, kind: input, shape index: {}]   ;;  %s905_s4 = inlined_call_operand.vmem [shape: f32[2,128], index: 4, kind: input, shape index: {}]   ;;  %s906_s5 = inlined_call_operand.hbm [shape: f32[16,128], index: 5, kind: output, shape index: {}]  }
   0x1   :  { %12 = vsyncpa [#allocation3 + $0x1], 0 }
   0x2   :  { %13 = vsyncpa [#allocation4], 0 }
   0x3   :  { %15 = vsyncpa [#allocation4 + $0x1], 0  ;;  %s715_s18 = smov 0   ;;  %s717_s19 = smov 0  }
   0x4   :  { %s719_s20 = smov 0   ;;  %s721_s21 = smov 0  }
   0x5 LB: > { %s736_s22 = sadd.s32 4294967295, %s679_s21   ;;  %s508_s23 = sadd.s32 4294967294, %s679_s21   ;;  %s679_s21 = sphi %s721_s21, %s921_s21   ;;  %s675_s20 = sphi %s719_s20, %s920_s20   ;;  %s671_s19 = sphi %s717_s19, %s919_s19   ;;  %s667_s18 = sphi %s715_s18, %s918_s18  }
   0x6   : > { %s740_s24 = sadd.s32 1, %s679_s21   ;;  %s80_s25 = sadd.s32 1, %s675_s20 }
   0x7   : > { %s77_s26 = ssub.s32 %s679_s21, %s740_s24  ;;  %p87_p0 = scmp.ne.s32.totalorder %s675_s20, %s671_s19 }
   0x8   : > { %p78_p1 = scmp.eq.s32.totalorder %s77_s26, 0  ;;  %p88_p2 = scmp.eq.s32.totalorder %s679_s21, 0 }
   0x9   : > { %p93_p3 = scmp.ne.s32.totalorder %s671_s19, %s667_s18  ;;  %p94_p4 = scmp.eq.s32.totalorder %s736_s22, 0 }
   0xa   : > { %s752_s27 = scalar_select %p78_p1, %s675_s20, %s80_s25  }
   0xb   : > { %p754_p5 = por %p88_p2, %p87_p0  ;;  %p758_p6 = por %p94_p4, %p93_p3 }
   0xc   : > { %p159_p7 = scmp.eq.s32.totalorder %s736_s22, 1  ;;  %p165_p8 = scmp.eq.s32.totalorder %s508_s23, 1 }
   0xd   : > { %p543_p10 = scmp.lt.s32.totalorder %s679_s21, 2  ;;  %s205_s7 = sand.u32 1, %s675_s20  }
   0xe   : > { %p765_p11 = por %p159_p7, %p87_p0  ;;  %p769_p12 = por %p165_p8, %p93_p3 }
   0xf   : > { %s512_s8 = sshll.u32 %s679_s21, 7  ;;  %s511_s9 = sshll.u32 %s205_s7, 3 }
  0x10   : > { %s910_s30 = scalar_select %p765_p11, 1, 0 }
  0x11   : > { %s911_s6 = scalar_select %p769_p12, 1, 0 }
  0x12   : > { %s778_s12 = scalar_lea.hbm %s903_s2, %s512_s8  ;;  %s209_s13 = scalar_lea.vmem [#allocation2], %s511_s9 }
  0x13   : > { %s216_s14 = sshll.u32 %s209_s13, 4  ;;  %p782_p13 = pnand %p543_p10, %p754_p5  ;;  %s786_s14 = int_to_ptr.vmem [resolvable:$true] %s216_s14 }
  0x14   : > { %s206_s16 = scalar_lea.sflag [#allocation3], %s205_s7  ;;  %s583_s17 = scalar_lea.hbm %s778_s12, 128 }
  0x15   : > { %p584_p2 = scmp.ne.s32.totalorder %s778_s12, %s583_s17  ;;  %p585_p3 = pneg %p782_p13 }
  0x16   : > { %s588_s26 = scalar_lea.hbm %s903_s2, 256  ;;  %p589_p5 = scmp.lt.u32.totalorder %s778_s12, %s903_s2 }
  0x17   : > { %p586_p4 = pnand %p585_p3, %p584_p2  ;;  %p590_p8 = scmp.lt.u32.totalorder %s588_s26, %s583_s17 }
  0x18   : > { %p592_p9 = scmp.lt.u32.totalorder %s583_s17, %s778_s12 }
  0x19   : > { %p587_p7 = pneg %p586_p4  ;;  %p591_p10 = por %p590_p8, %p589_p5 }
  0x1b   : > { %p593_p0 = por %p592_p9, %p591_p10 }
  0x1d   : > { %p594_p1 = pnand %p593_p0, %p587_p7 }
  0x1f   : > { %597 = shalt.err (!%p594_p1)
}
  0x20   : > { %s598_s7 = scalar_lea.vmem %s786_s14, 128  ;;  %s681_s9 = smov [#allocation2]  }
  0x21   : > { %p599_p2 = scmp.ne.s32.totalorder %s786_s14, %s598_s7  ;;  %s603_s10 = sshll.u32 %s681_s9, 4  ;;  %s604_s10 = int_to_ptr.vmem [resolvable:$false] %s603_s10 }
  0x22   : > { %s605_s11 = scalar_lea.vmem %s604_s10, 256  ;;  %p606_p11 = scmp.lt.s32.totalorder %s786_s14, %s604_s10 }
  0x23   : > { %p601_p4 = pnand %p599_p2, %p585_p3  ;;  %p607_p5 = scmp.lt.s32.totalorder %s605_s11, %s598_s7 }
  0x25   : > { %p602_p12 = pneg %p601_p4  ;;  %p608_p8 = por %p607_p5, %p606_p11 }
  0x27   : > { %p609_p9 = pnand %p608_p8, %p602_p12 }
  0x29   : > { %612 = shalt.err (!%p609_p9)
}
  0x2a   : > { %538 = dma.hbm_to_vmem [thread:$0]  (!%p782_p13), %s778_s12, 128, %s786_s14, %s206_s16  }
  0x2b   : > { %p913_p0 = scmp.lt.s32.totalorder %s679_s21, 3  ;;  %p914_p1 = scmp.ge.s32.totalorder %s679_s21, 1 }
  0x2d   : > { %p222_p3 = pnand %p914_p1, %p913_p0 }
  0x2e   : > { %s820_s13 = sand.u32 (!%p222_p3), 1, %s671_s19  }
  0x2f   : > { %225 = sbr.rel (%p222_p3) target bundleno = 607 (0x25f), region = 40  ;;  %s514_s17 = sshll.u32 (!%p222_p3), %s820_s13, 3 }
  0x30   : > { %s228_s23 = scalar_lea.sflag (!%p222_p3), [#allocation3], %s820_s13  ;;  %s231_s15 = scalar_lea.vmem (!%p222_p3), [#allocation2], %s514_s17 }
  0x36   : > { %658 = dma.done.wait (%p758_p6), %s228_s23, 128  }
  0x37   : > { %660 = vsyncadd (%p758_p6), %s228_s23, 4294967168  ;;  %p266_p11 = scmp.lt.s32.totalorder %s736_s22, 1  ;;  %vm341_vm0 = vcmask 130048   ;;  %vm276_vm1 = vcmask 64512   ;;  %v363_v2 = vld [vmem:[%s231_s15] sm:$0xff]  ;;  %v337_v6 = vlaneseq  ;;  %vm293_vm4 = vcmask 1043456  }
  0x38   : > { %v364_v5 = vsel %vm341_vm0, %v363_v2, -inf  ;;  %v289_v23 = vld [vmem:[%s904_s3] sm:$0xf]  ;;  %v682_v24 = vmov 0.0   ;;  %vm683_vm5 = vmmov 0   ;;  %s520_s23 = sshll.u32 %s736_s22, 7 }
  0x39   : > { %s267_s12 = scalar_select %p266_p11, %s736_s22, 1  ;;  %v338_v10 = vand.u32 127, %v337_v6  ;;  %525 = vmatprep.subr.bf16.mxu0 %v682_v24  ;;  %v295_v25 = vsel %vm293_vm4, %v289_v23, 0  ;;  %527 = vmatprep.mubr.msk.bf16.mxu0 %vm683_vm5, %v682_v24  ;;  %v386_v43 = vshrl.u32 %v337_v6, 7  ;;  %v339_v51 = vld [vmem:[%s905_s4] sm:$0x3] }
  0x3a   : > { %526 = vmatpush3.bf16.msra.mxu0 %v295_v25  ;;  %s265_s15 = scalar_lea.vmem [#allocation5], %s514_s17  ;;  %s857_s25 = scalar_lea.hbm %s906_s5, %s520_s23 }
  0x3b   : > { %s516_s14 = sshll.u32 %s267_s12, 3  ;;  %v387_v47 = vsub.s32 0, %v386_v43  ;;  %v393_v49 = vsub.s32 1, %v386_v43  ;;  %s414_s12 = sshll.u32 %s265_s15, 4  ;;  %s859_s12 = int_to_ptr.vmem [resolvable:$true] %s414_s12 }
  0x3c   : > { %s273_s26 = scalar_lea.vmem %s902_s1, %s516_s14  ;;  %s269_s7 = scalar_lea.vmem %s901_s0, %s516_s14 }
  0x3d   : > { %v340_v0 = vld [vmem:[%s273_s26] sm:$0xff]  ;;  %v388_v52 = vrot.slane %v339_v51, %v387_v47  ;;  %v394_v55 = vrot.slane %v339_v51, %v393_v49  ;;  %s401_s22 = scalar_lea.sflag [#allocation4], %s820_s13  ;;  %s613_s17 = scalar_lea.vmem %s859_s12, 128 }
  0x3e   : > { %v275_v1 = vld [vmem:[%s269_s7] sm:$0xff]  ;;  %v342_v3 = vsel %vm341_vm0, %v340_v0, -inf  ;;  %p614_p6 = scmp.ne.s32.totalorder %s859_s12, %s613_s17  ;;  %p915_p12 = scmp.ne.s32.totalorder %s910_s30, 0 }
  0x3f   : > { %v277_v4 = vsel %vm276_vm1, %v275_v1, -inf  ;;  %343 = vmax.xlane.f32.xlu1 %v342_v3  ;;  %s684_s26 = smov [#allocation5]  }
  0x40   : > { %278 = vmax.xlane.f32.xlu0 %v277_v4  ;;  %p615_p13 = pnand %p614_p6, %p915_p12  ;;  %s617_s28 = sshll.u32 %s684_s26, 4  ;;  %s618_s28 = int_to_ptr.vmem [resolvable:$false] %s617_s28 }
  0x41   : > { %s619_s8 = scalar_lea.vmem %s618_s28, 256  ;;  %p620_p10 = scmp.lt.s32.totalorder %s859_s12, %s618_s28 }
  0x42   : > { %p616_p7 = pneg %p615_p13  ;;  %p621_p2 = scmp.lt.s32.totalorder %s619_s8, %s613_s17 }
  0x43   : > { %365 = vmax.xlane.f32.xlu1 %v364_v5 }
  0x44   : > { %p622_p4 = por %p621_p2, %p620_p10 }
  0x46   : > { %p623_p5 = pnand %p622_p4, %p616_p7 }
  0xcc   : > { %v344_v7 = vpop.xlane.xlu1 %343 }
  0xcd   : > { %v279_v8 = vpop.xlane.xlu0 %278  ;;  %vm345_vm2 = vcmp.eq.f32.partialorder %v340_v0, %v344_v7 }
  0xce   : > { %v280_v9 = vsub.f32 %v275_v1, %v279_v8  ;;  %v346_v14 = vsel %vm345_vm2, %v338_v10, 16 }
  0xcf   : > { %v347_v17 = vsel %vm341_vm0, %v346_v14, 2147483647 }
  0xd0   : > { %v281_v11 = vmul.f32 1.442695, %v280_v9  ;;  %v366_v12 = vpop.xlane.xlu1 %365  ;;  %v349_v19 = vshra.s32 %v347_v17, 16  ;;  %v348_v31 = vand.u32 65535, %v347_v17 }
  0xd1   : > { %vm367_vm3 = vcmp.eq.f32.partialorder %v363_v2, %v366_v12 }
  0xd2   : > { %579 = vpow2.f32 %v281_v11  ;;  %v368_v13 = vsel %vm367_vm3, %v338_v10, 16  ;;  %v351_v22 = vcvt.s32.f32 %v349_v19  ;;  %v350_v33 = vcvt.s32.f32 %v348_v31 }
  0xd3   : > { %v369_v15 = vsel %vm341_vm0, %v368_v13, 2147483647 }
  0xd4   : > { %v371_v16 = vshra.s32 %v369_v15, 16  ;;  %v370_v26 = vand.u32 65535, %v369_v15 }
  0xd6   : > { %v373_v18 = vcvt.s32.f32 %v371_v16  ;;  %v372_v28 = vcvt.s32.f32 %v370_v26 }
  0xd8   : > { %374 = vmin.xlane.f32.xlu1 %v373_v18 }
  0xdc   : > { %v580_v20 = vpop.eup %579 }
  0xdd   : > { %v283_v21 = vsel %vm276_vm1, %v580_v20, 0.0 }
  0xde   : > { %284 = vadd.xlane.f32.xlu0 %v283_v21 }
  0xe2   : > { %352 = vmin.xlane.f32.xlu0 %v351_v22 }
 0x165   : > { %v375_v27 = vpop.xlane.xlu1 %374 }
 0x166   : > { %vm376_vm6 = vcmp.eq.f32.partialorder %v373_v18, %v375_v27  ;;  %v381_v41 = vcvt.f32.s32 %v375_v27 }
 0x167   : > { %v377_v29 = vsel %vm376_vm6, %v372_v28, inf }
 0x168   : > { %378 = vmin.xlane.f32.xlu1 %v377_v29  ;;  %v382_v46 = vshll.u32 %v381_v41, 16 }
 0x16b   : > { %v285_v30 = vpop.xlane.xlu0 %284 }
 0x16c   : > { %581 = vrcp.f32 %v285_v30 }
 0x16f   : > { %v353_v32 = vpop.xlane.xlu0 %352 }
 0x170   : > { %vm354_vm7 = vcmp.eq.f32.partialorder %v351_v22, %v353_v32  ;;  %v359_v39 = vcvt.f32.s32 %v353_v32 }
 0x171   : > { %v355_v34 = vsel %vm354_vm7, %v350_v33, inf }
 0x172   : > { %356 = vmin.xlane.f32.xlu0 %v355_v34  ;;  %v360_v44 = vshll.u32 %v359_v39, 16 }
 0x176   : > { %v582_v35 = vpop.eup %581 }
 0x177   : > { %v287_v36 = vmul.f32 %v582_v35, %v580_v20 }
 0x179   : > { %v288_v37 = vpack.c.bf16 %v287_v36, %v287_v36 }
 0x17b   : > { %528 = vmatmul.mubr.msk.bf16.vlgmr.msra.gmra.mrb[0].mxu0 %vm276_vm1, %v288_v37 }
 0x1f5   : > { %v379_v40 = vpop.xlane.xlu1 %378 }
 0x1f6   : > { %v380_v45 = vcvt.f32.s32 %v379_v40 }
 0x1f8   : > { %v383_v50 = vadd.s32 %v382_v46, %v380_v45 }
 0x1fa   : > { %v384_v54 = vcvt.s32.f32 %v383_v50 }
 0x1fc   : > { %v395_v57 = vsub.f32 %v384_v54, %v394_v55 }
 0x1fe   : > { %v396_v59 = vand.u32 2147483647, %v395_v57 }
 0x1ff   : > { %v357_v38 = vpop.xlane.xlu0 %356 }
 0x200   : > { %v358_v42 = vcvt.f32.s32 %v357_v38 }
 0x202   : > { %v361_v48 = vadd.s32 %v360_v44, %v358_v42 }
 0x204   : > { %v362_v53 = vcvt.s32.f32 %v361_v48 }
 0x206   : > { %v389_v56 = vsub.f32 %v362_v53, %v388_v52 }
 0x208   : > { %v390_v58 = vand.u32 2147483647, %v389_v56 }
 0x20a   : > { %v397_v60 = vadd.f32 %v396_v59, %v390_v58 }
 0x24e   : > { %v331_v61 = vpop.f32.mrb[0].mxu0 }
 0x24f   : > { %v398_v62 = vadd.f32 %v397_v60, %v331_v61  ;;  %v529_v63 = vpop.f32.mrb[1].mxu0 }
 0x250   : > { %v334_v0 = vpop.f32.mrb[2].mxu0 }
 0x251   : > { %399 = vst [vmem:[%s265_s15] sm:$0xff] %v398_v62  ;;  %v530_v1 = vpop.f32.mrb[3].mxu0 }
 0x252   : > { %626 = shalt.err (!%p623_p5)
}
 0x253   : > { %s627_s13 = scalar_lea.hbm %s857_s25, 128  ;;  %s631_s9 = scalar_lea.hbm %s906_s5, 256 }
 0x254   : > { %p628_p8 = scmp.ne.s32.totalorder %s857_s25, %s627_s13  ;;  %p632_p1 = scmp.lt.u32.totalorder %s857_s25, %s906_s5 }
 0x255   : > { %p633_p3 = scmp.lt.u32.totalorder %s631_s9, %s627_s13  ;;  %p635_p6 = scmp.lt.u32.totalorder %s627_s13, %s857_s25 }
 0x256   : > { %p629_p9 = pnand %p628_p8, %p915_p12 }
 0x257   : > { %p634_p11 = por %p633_p3, %p632_p1 }
 0x258   : > { %p630_p0 = pneg %p629_p9 }
 0x259   : > { %p636_p13 = por %p635_p6, %p634_p11 }
 0x25b   : > { %p637_p7 = pnand %p636_p13, %p630_p0 }
 0x25d   : > { %640 = shalt.err (!%p637_p7)
}
 0x25e   : > { %533 = dma.vmem_to_hbm [thread:$0]  (%p915_p12), %s859_s12, 128, %s857_s25, %s401_s22  }
 0x25f PF: > { %s426_s23 = sand.u32 1, %s667_s18   ;;  %p916_p10 = scmp.ne.s32.totalorder %s911_s6, 0 }
 0x260   : > { %p917_p2 = scmp.ge.s32.totalorder %s679_s21, 2  ;;  %s427_s15 = scalar_lea.sflag [#allocation4], %s426_s23 }
 0x262   : > { %p540_p4 = pnand %p917_p2, %p916_p10 }
 0x264   : > { %662 = dma.done.wait (!%p540_p4), %s427_s15, 128  }
 0x265   : > { %664 = vsyncadd (!%p540_p4), %s427_s15, 4294967168  ;;  %p18_p5 = scmp.ge.s32.totalorder %s740_s24, 4   ;;  %s918_s18 = smov %s671_s19 }
 0x266   : > { %s919_s19 = smov %s675_s20  ;;  %s920_s20 = smov %s752_s27 }
 0x267   : > { %s921_s21 = smov %s740_s24  ;;  %20 = sbr.rel (!%p18_p5) target bundleno = 5 (0x5), region = 91 }
 0x26e   :  { %432 = vsyncpa [#allocation3], 1 }
 0x26f   :  { %434 = vsyncpa [#allocation3 + $0x1], 1 }
 0x270   :  { %435 = vsyncpa [#allocation4], 1 }
 0x271   :  { %437 = vsyncpa [#allocation4 + $0x1], 1 }

</bundles_post_ra>
